<compile_context>
chip_gen: v7x
topology: tpu7x:2x2x1
jax: 0.10.0
libtpu: 0.0.40
codegen_flags: <defaults>
</compile_context>

<pallas_src>
import functools

import numpy as np
import jax
import jax.numpy as jnp
from jax import lax
from jax.experimental import pallas as pl
from jax.experimental.pallas import tpu as pltpu


_NEG = -3.0e38   # finite sentinel (no -inf on the VPU max path); representable in bf16


def _point_downsample_kernel(xyz_pk_ref, xyz_n3_ref, feats_ref,
                             cxyz_ref, cfeats_ref,
                             child_sc, acc_sc, cnt_sc, f0_sc,
                             *, m, k, r2, nc, pool_bf16):
    f32 = jnp.float32
    ci = pl.program_id(1)
    n_sub = xyz_pk_ref.shape[3]          # n // 8
    n = 8 * n_sub
    c = feats_ref.shape[1]

    # ---------------- phase 1 (first chunk only): FPS + child scatter + state init ----------
    @pl.when(ci == 0)
    def _fps():
        # packed (8, n//8) layout: point i lives at (i // n_sub, i % n_sub)
        xx = xyz_pk_ref[0, 0].astype(f32)
        yy = xyz_pk_ref[0, 1].astype(f32)
        zz = xyz_pk_ref[0, 2].astype(f32)
        x2 = xx * xx + yy * yy + zz * zz                       # ||x||^2, precomputed

        iota_pk = (lax.broadcasted_iota(jnp.int32, (8, n_sub), 0) * n_sub
                   + lax.broadcasted_iota(jnp.int32, (8, n_sub), 1))
        iota_m = lax.broadcasted_iota(jnp.int32, (1, m), 1)
        lane3 = lax.broadcasted_iota(jnp.int32, (1, 3), 1)

        def gather_pt(idx):
            # O(1) dynamic-slice gather of one point (no O(n) one-hot / reduce)
            row = xyz_n3_ref[0, pl.ds(idx, 1), :].astype(f32)  # (1, 3)
            px = jnp.sum(jnp.where(lane3 == 0, row, 0.0))
            py = jnp.sum(jnp.where(lane3 == 1, row, 0.0))
            pz = jnp.sum(jnp.where(lane3 == 2, row, 0.0))
            return px, py, pz

        # point 0 is always sampled first
        px0, py0, pz0 = gather_pt(0)
        zero_m = jnp.zeros((1, m), f32)
        cx0 = jnp.where(iota_m == 0, px0, zero_m)
        cy0 = jnp.where(iota_m == 0, py0, zero_m)
        cz0 = jnp.where(iota_m == 0, pz0, zero_m)

        def body(j, carry):
            temp, px, py, pz, cx, cy, cz = carry
            cross = xx * px + yy * py + zz * pz                # O(n) VPU, full occupancy
            pt2 = px * px + py * py + pz * pz
            d = x2 - 2.0 * cross + pt2
            temp = jnp.minimum(temp, d)
            maxval = jnp.max(temp)
            # first index achieving the max (matches np.argmax tie-breaking)
            cand = jnp.where(temp == maxval, iota_pk, n)
            new = jnp.min(cand)
            px, py, pz = gather_pt(new)
            at_j = iota_m == j
            cx = jnp.where(at_j, px, cx)
            cy = jnp.where(at_j, py, cy)
            cz = jnp.where(at_j, pz, cz)
            return temp, px, py, pz, cx, cy, cz

        temp0 = jnp.full((8, n_sub), 1e10, f32)
        _, _, _, _, cx, cy, cz = lax.fori_loop(
            1, m, body, (temp0, px0, py0, pz0, cx0, cy0, cz0))

        child_sc[0:1, :] = cx
        child_sc[1:2, :] = cy
        child_sc[2:3, :] = cz
        cxyz_ref[0] = child_sc[...].astype(cxyz_ref.dtype)     # lane-dense (3, m) output

        acc_sc[...] = jnp.full((c, m), _NEG, f32)
        cnt_sc[...] = jnp.zeros((1, m), f32)
        # CUDA ball_query leaves index 0 when the ball is empty (never triggers when the
        # queries are sampled from xyz itself; kept for parity).
        f0_sc[...] = feats_ref[0, :, 0:1].astype(f32)

    # ------- phase 2 (every chunk): ball query (first-k prefix rank) + masked max-pool ------
    start = pl.multiple_of(ci * nc, nc)
    xyz_c = xyz_n3_ref[0, pl.ds(start, nc), :].astype(f32)     # (nc, 3)
    x2c = jnp.sum(xyz_c * xyz_c, axis=1, keepdims=True)        # (nc, 1)

    pool_dt = jnp.bfloat16 if pool_bf16 else f32
    feats_c = feats_ref[0].astype(pool_dt)                     # (c, nc) streamed chunk

    ii = lax.broadcasted_iota(jnp.int32, (nc, nc), 0)
    jj = lax.broadcasted_iota(jnp.int32, (nc, nc), 1)
    tri = (jj <= ii).astype(jnp.bfloat16)                      # inclusive prefix-count matrix

    MT = 256                                                   # lane-aligned m tile
    for j0 in range(0, m, MT):
        mt = min(MT, m - j0)
        child_t = child_sc[:, j0:j0 + mt]                      # (3, mt)
        c2_t = jnp.sum(child_t * child_t, axis=0, keepdims=True)   # (1, mt)
        cross = jnp.dot(xyz_c, child_t, preferred_element_type=f32,
                        precision=lax.Precision.HIGHEST)       # (nc, mt) on the MXU
        d2 = x2c + c2_t - 2.0 * cross
        mask = d2 < r2                                         # (nc, mt)
        cnt_old = cnt_sc[:, j0:j0 + mt]                        # (1, mt) running count
        rank = cnt_old + jnp.dot(tri, mask.astype(jnp.bfloat16),
                                 preferred_element_type=f32)   # exact small ints
        sel = jnp.logical_and(mask, rank <= float(k))          # first k in index order
        grouped = jnp.where(sel[None, :, :], feats_c[:, :, None], _NEG)   # (c, nc, mt)
        pooled = jnp.max(grouped, axis=1).astype(f32)          # (c, mt)
        acc_sc[:, j0:j0 + mt] = jnp.maximum(acc_sc[:, j0:j0 + mt], pooled)
        cnt_sc[:, j0:j0 + mt] = cnt_old + jnp.sum(mask.astype(f32), axis=0, keepdims=True)

    @pl.when(ci == pl.num_programs(1) - 1)
    def _write():
        out = jnp.where(cnt_sc[...] > 0.0, acc_sc[...], f0_sc[...])
        cfeats_ref[0] = out.astype(cfeats_ref.dtype)


def _pick_chunk(n):
    # nc=128 matches the v5e MXU tile and minimizes the prefix-count matmul work; fall
    # back to a single chunk when n is not 128-aligned.
    return 128 if n % 128 == 0 else n


def _vmem_capacity_bytes():
    try:
        return int(pltpu.get_tpu_info().vmem_capacity_bytes)
    except Exception:
        return 64 * 1024 * 1024


def point_downsample(xyz, feats, *, k, radius, scale_factor=2):
    """xyz: (bs, n, 3), feats: (bs, c, n) -> (child_xyz (bs, m, 3), child_feats (bs, c, m))."""
    bs, n, _ = xyz.shape
    c = feats.shape[1]
    assert n % 8 == 0, "n must be a multiple of 8"
    assert n % scale_factor == 0
    m = n // scale_factor
    nc = _pick_chunk(n)
    num_chunks = n // nc

    # packed (3, 8, n//8) view of xyz for the FPS phase (full lane + sublane occupancy)
    xyz_pk = jnp.transpose(xyz, (0, 2, 1)).reshape(bs, 3, 8, n // 8)
    pool_bf16 = feats.dtype == jnp.bfloat16

    kernel = functools.partial(_point_downsample_kernel, m=m, k=k,
                               r2=float(radius) ** 2, nc=nc, pool_bf16=pool_bf16)

    out_shapes = (jax.ShapeDtypeStruct((bs, 3, m), xyz.dtype),   # lane-dense; transposed below
                  jax.ShapeDtypeStruct((bs, c, m), feats.dtype))

    # rough, generation-aware VMEM budget
    def _rup(a, b):
        return -(-a // b) * b
    f4 = 4
    c_pad = _rup(c, 8)
    m_pad = _rup(max(m, 128), 128)
    lane_n = _rup(max(n // 8, 128), 128)
    est = f4 * (
        2 * (3 * 8 * lane_n)                      # packed xyz (double-buffered)
        + 2 * ((n // 8) * 8 * 128)                # (n, 3) block, lane-padded to 128
        + 2 * (c_pad * _rup(max(nc, 128), 128))   # streamed feats chunk
        + 2 * (8 * m_pad + c_pad * m_pad)         # outputs
        + (16 * m_pad + c_pad * m_pad + c_pad * 128)          # scratch
        + (6 * nc * 256 + nc * nc + c_pad * nc * 256 + 2 * c_pad * m_pad))  # working set
    cap = _vmem_capacity_bytes()
    vmem_limit = int(min(max(32 * 1024 * 1024, 2 * est),
                         max(cap - 2 * 1024 * 1024, 32 * 1024 * 1024)))

    cxyz_t, cfeats = pl.pallas_call(
        kernel,
        out_shape=out_shapes,
        grid_spec=pltpu.PrefetchScalarGridSpec(
            num_scalar_prefetch=0,
            grid=(bs, num_chunks),
            in_specs=[pl.BlockSpec((1, 3, 8, n // 8), lambda b, ci: (b, 0, 0, 0)),
                      pl.BlockSpec((1, n, 3), lambda b, ci: (b, 0, 0)),
                      pl.BlockSpec((1, c, nc), lambda b, ci: (b, 0, ci))],
            out_specs=[pl.BlockSpec((1, 3, m), lambda b, ci: (b, 0, 0)),
                       pl.BlockSpec((1, c, m), lambda b, ci: (b, 0, 0))],
            scratch_shapes=[pltpu.VMEM((3, m), jnp.float32),     # child coordinates
                            pltpu.VMEM((c, m), jnp.float32),     # running max accumulator
                            pltpu.VMEM((1, m), jnp.float32),     # running in-radius count
                            pltpu.VMEM((c, 1), jnp.float32)],    # feats of point 0 (fallback)
        ),
        compiler_params=pltpu.CompilerParams(
            dimension_semantics=("parallel", "arbitrary"),
            vmem_limit_bytes=vmem_limit),
    )(xyz_pk, xyz, feats)

    child_xyz = jnp.transpose(cxyz_t, (0, 2, 1))                 # cheap XLA layout plumbing
    return child_xyz, cfeats


def _reference(xyz, feats, k, radius, scale_factor):
    """Pure-numpy reproduction of FPS + ball-query + max-pool (same algorithm / same math)."""
    xyz = np.asarray(xyz, np.float32)
    feats = np.asarray(feats, np.float32)
    bs, n, _ = xyz.shape
    c = feats.shape[1]
    m = n // scale_factor
    r2 = np.float32(radius) ** 2
    cx = np.zeros((bs, m, 3), np.float32)
    cf = np.zeros((bs, c, m), np.float32)
    for b in range(bs):
        x2 = np.sum(xyz[b] * xyz[b], axis=1)
        idxs = [0]
        temp = np.full(n, 1e10, np.float32)
        old = 0
        for _ in range(1, m):
            pt = xyz[b, old]
            d = x2 - 2.0 * (xyz[b] @ pt) + np.sum(pt * pt)
            temp = np.minimum(temp, d)
            old = int(np.argmax(temp))
            idxs.append(old)
        child = xyz[b, idxs]
        cx[b] = child
        for j in range(m):
            d2 = x2 - 2.0 * (xyz[b] @ child[j]) + np.sum(child[j] ** 2)
            inside = np.where(d2 < r2)[0][:k]
            if inside.size == 0:
                inside = np.array([0])
            cf[b, :, j] = feats[b][:, inside].max(axis=1)
    return cx, cf


if __name__ == "__main__":
    key = jax.random.PRNGKey(0)
    kx1, kf1, kx2, kf2 = jax.random.split(key, 4)

    # ---- config 1: tiny smoke test (single chunk, single m-tile) ----
    bs, n, c0 = 2, 16, 4
    scale_factor, k, radius = 2, 4, 0.45
    # grid-quantized coordinates keep all distances exactly representable -> no boundary flakiness
    xyz = jnp.round(jax.random.uniform(kx1, (bs, n, 3), dtype=jnp.float32) * 8.0) / 8.0
    feats = jax.random.normal(kf1, (bs, c0, n), dtype=jnp.float32)

    child_xyz, child_feats = point_downsample(
        xyz, feats, k=k, radius=radius, scale_factor=scale_factor)
    jax.block_until_ready((child_xyz, child_feats))

    ref_xyz, ref_feats = _reference(xyz, feats, k, radius, scale_factor)
    assert child_xyz.shape == (bs, n // scale_factor, 3)
    assert child_feats.shape == (bs, c0, n // scale_factor)
    assert np.allclose(np.asarray(child_xyz), ref_xyz, atol=1e-5)
    assert np.allclose(np.asarray(child_feats), ref_feats, atol=1e-5)

    # ---- config 2: multi-chunk prefix-count carry (8 chunks) + multi-m-tile pooling ----
    bs_b, n_b, c_b = 1, 1024, 8
    sf_b, k_b, radius_b = 2, 8, 0.3
    xyz_b = jnp.round(jax.random.uniform(kx2, (bs_b, n_b, 3), dtype=jnp.float32) * 8.0) / 8.0
    feats_b = jax.random.normal(kf2, (bs_b, c_b, n_b), dtype=jnp.float32)

    cxb, cfb = point_downsample(xyz_b, feats_b, k=k_b, radius=radius_b, scale_factor=sf_b)
    jax.block_until_ready((cxb, cfb))
    rxb, rfb = _reference(xyz_b, feats_b, k_b, radius_b, sf_b)
    assert np.allclose(np.asarray(cxb), rxb, atol=1e-5)
    assert np.allclose(np.asarray(cfb), rfb, atol=1e-5)

    print("KERNEL_OK")
</pallas_src>

<mosaic_0001>
module attributes {stable_mosaic.version = 11 : i64} {
  func.func @_point_downsample_kernel(%arg0: i32, %arg1: i32, %arg2: memref<1x3x8x2xf32, #tpu.memory_space<vmem>>, %arg3: memref<1x16x3xf32, #tpu.memory_space<vmem>>, %arg4: memref<1x4x16xf32, #tpu.memory_space<vmem>>, %arg5: memref<1x3x8xf32, #tpu.memory_space<vmem>>, %arg6: memref<1x4x8xf32, #tpu.memory_space<vmem>>, %arg7: memref<3x8xf32, #tpu.memory_space<vmem>>, %arg8: memref<4x8xf32, #tpu.memory_space<vmem>>, %arg9: memref<1x8xf32, #tpu.memory_space<vmem>>, %arg10: memref<4x1xf32, #tpu.memory_space<vmem>>) attributes {dimension_semantics = [#tpu.dimension_semantics<parallel>, #tpu.dimension_semantics<arbitrary>], iteration_bounds = array<i64: 2, 1>, scalar_prefetch = 0 : i64, scratch_operands = 4 : i64, tpu.core_type = #tpu.core_type<tc>, window_params = [{transform_indices = @transform_0, window_bounds = array<i64: 1, 3, 8, 2>}, {transform_indices = @transform_1, window_bounds = array<i64: 1, 16, 3>}, {transform_indices = @transform_2, window_bounds = array<i64: 1, 4, 16>}, {transform_indices = @transform_3, window_bounds = array<i64: 1, 3, 8>}, {transform_indices = @transform_4, window_bounds = array<i64: 1, 4, 8>}]} {
    %c0_i32 = arith.constant 0 : i32
    %0 = arith.cmpi eq, %arg1, %c0_i32 : i32
    %1 = arith.extui %0 : i1 to i32
    %c0_i32_0 = arith.constant 0 : i32
    %2 = arith.cmpi ne, %1, %c0_i32_0 : i32
    scf.if %2 {
      %c0_26 = arith.constant 0 : index
      %c0_27 = arith.constant 0 : index
      %c0_28 = arith.constant 0 : index
      %c0_29 = arith.constant 0 : index
      %63 = vector.load %arg2[%c0_26, %c0_27, %c0_28, %c0_29] : memref<1x3x8x2xf32, #tpu.memory_space<vmem>>, vector<1x1x8x2xf32>
      %64 = vector.shape_cast %63 : vector<1x1x8x2xf32> to vector<8x2xf32>
      %c0_30 = arith.constant 0 : index
      %c1 = arith.constant 1 : index
      %c0_31 = arith.constant 0 : index
      %c0_32 = arith.constant 0 : index
      %65 = vector.load %arg2[%c0_30, %c1, %c0_31, %c0_32] : memref<1x3x8x2xf32, #tpu.memory_space<vmem>>, vector<1x1x8x2xf32>
      %66 = vector.shape_cast %65 : vector<1x1x8x2xf32> to vector<8x2xf32>
      %c0_33 = arith.constant 0 : index
      %c2 = arith.constant 2 : index
      %c0_34 = arith.constant 0 : index
      %c0_35 = arith.constant 0 : index
      %67 = vector.load %arg2[%c0_33, %c2, %c0_34, %c0_35] : memref<1x3x8x2xf32, #tpu.memory_space<vmem>>, vector<1x1x8x2xf32>
      %68 = vector.shape_cast %67 : vector<1x1x8x2xf32> to vector<8x2xf32>
      %69 = arith.mulf %64, %64 : vector<8x2xf32>
      %70 = arith.mulf %66, %66 : vector<8x2xf32>
      %71 = arith.addf %69, %70 : vector<8x2xf32>
      %72 = arith.mulf %68, %68 : vector<8x2xf32>
      %73 = arith.addf %71, %72 : vector<8x2xf32>
      %74 = tpu.iota {dimensions = array<i32: 0>} : vector<8x2xi32>
      %c2_i32 = arith.constant 2 : i32
      %75 = vector.broadcast %c2_i32 : i32 to vector<8x2xi32>
      %76 = arith.muli %74, %75 : vector<8x2xi32>
      %77 = tpu.iota {dimensions = array<i32: 1>} : vector<8x2xi32>
      %78 = arith.addi %76, %77 : vector<8x2xi32>
      %79 = tpu.iota {dimensions = array<i32: 1>} : vector<1x8xi32>
      %80 = tpu.iota {dimensions = array<i32: 1>} : vector<1x3xi32>
      %c0_36 = arith.constant 0 : index
      %c0_37 = arith.constant 0 : index
      %c0_38 = arith.constant 0 : index
      %81 = vector.load %arg3[%c0_36, %c0_37, %c0_38] : memref<1x16x3xf32, #tpu.memory_space<vmem>>, vector<1x1x3xf32>
      %82 = vector.shape_cast %81 : vector<1x1x3xf32> to vector<1x3xf32>
      %c0_i32_39 = arith.constant 0 : i32
      %83 = vector.broadcast %c0_i32_39 : i32 to vector<1x3xi32>
      %84 = arith.cmpi eq, %80, %83 : vector<1x3xi32>
      %cst_40 = arith.constant 0.000000e+00 : f32
      %85 = vector.broadcast %cst_40 : f32 to vector<1x3xf32>
      %86 = arith.select %84, %82, %85 : vector<1x3xi1>, vector<1x3xf32>
      %87 = vector.shape_cast %86 : vector<1x3xf32> to vector<1x1x3xf32>
      %cst_41 = arith.constant dense<0.000000e+00> : vector<1xf32>
      %88 = vector.multi_reduction <add>, %87, %cst_41 [1, 2] : vector<1x1x3xf32> to vector<1xf32>
      %89 = vector.shape_cast %88 : vector<1xf32> to vector<1x1x1xf32>
      %90 = vector.extract %89[0, 0, 0] : f32 from vector<1x1x1xf32>
      %c1_i32 = arith.constant 1 : i32
      %91 = vector.broadcast %c1_i32 : i32 to vector<1x3xi32>
      %92 = arith.cmpi eq, %80, %91 : vector<1x3xi32>
      %cst_42 = arith.constant 0.000000e+00 : f32
      %93 = vector.broadcast %cst_42 : f32 to vector<1x3xf32>
      %94 = arith.select %92, %82, %93 : vector<1x3xi1>, vector<1x3xf32>
      %95 = vector.shape_cast %94 : vector<1x3xf32> to vector<1x1x3xf32>
      %cst_43 = arith.constant dense<0.000000e+00> : vector<1xf32>
      %96 = vector.multi_reduction <add>, %95, %cst_43 [1, 2] : vector<1x1x3xf32> to vector<1xf32>
      %97 = vector.shape_cast %96 : vector<1xf32> to vector<1x1x1xf32>
      %98 = vector.extract %97[0, 0, 0] : f32 from vector<1x1x1xf32>
      %c2_i32_44 = arith.constant 2 : i32
      %99 = vector.broadcast %c2_i32_44 : i32 to vector<1x3xi32>
      %100 = arith.cmpi eq, %80, %99 : vector<1x3xi32>
      %cst_45 = arith.constant 0.000000e+00 : f32
      %101 = vector.broadcast %cst_45 : f32 to vector<1x3xf32>
      %102 = arith.select %100, %82, %101 : vector<1x3xi1>, vector<1x3xf32>
      %103 = vector.shape_cast %102 : vector<1x3xf32> to vector<1x1x3xf32>
      %cst_46 = arith.constant dense<0.000000e+00> : vector<1xf32>
      %104 = vector.multi_reduction <add>, %103, %cst_46 [1, 2] : vector<1x1x3xf32> to vector<1xf32>
      %105 = vector.shape_cast %104 : vector<1xf32> to vector<1x1x1xf32>
      %106 = vector.extract %105[0, 0, 0] : f32 from vector<1x1x1xf32>
      %cst_47 = arith.constant 0.000000e+00 : f32
      %107 = vector.broadcast %cst_47 : f32 to vector<1x8xf32>
      %c0_i32_48 = arith.constant 0 : i32
      %108 = vector.broadcast %c0_i32_48 : i32 to vector<1x8xi32>
      %109 = arith.cmpi eq, %79, %108 : vector<1x8xi32>
      %110 = vector.broadcast %90 : f32 to vector<1x8xf32>
      %111 = arith.select %109, %110, %107 : vector<1x8xi1>, vector<1x8xf32>
      %c0_i32_49 = arith.constant 0 : i32
      %112 = vector.broadcast %c0_i32_49 : i32 to vector<1x8xi32>
      %113 = arith.cmpi eq, %79, %112 : vector<1x8xi32>
      %114 = vector.broadcast %98 : f32 to vector<1x8xf32>
      %115 = arith.select %113, %114, %107 : vector<1x8xi1>, vector<1x8xf32>
      %c0_i32_50 = arith.constant 0 : i32
      %116 = vector.broadcast %c0_i32_50 : i32 to vector<1x8xi32>
      %117 = arith.cmpi eq, %79, %116 : vector<1x8xi32>
      %118 = vector.broadcast %106 : f32 to vector<1x8xf32>
      %119 = arith.select %117, %118, %107 : vector<1x8xi1>, vector<1x8xf32>
      %cst_51 = arith.constant 1.000000e+10 : f32
      %120 = vector.broadcast %cst_51 : f32 to vector<8x2xf32>
      %c1_i32_52 = arith.constant 1 : i32
      %c7_i32 = arith.constant 7 : i32
      %121 = arith.addi %c1_i32_52, %c7_i32 : i32
      %c1_i32_53 = arith.constant 1 : i32
      %122:7 = scf.for %arg11 = %c1_i32_52 to %121 step %c1_i32_53 iter_args(%arg12 = %120, %arg13 = %90, %arg14 = %98, %arg15 = %106, %arg16 = %111, %arg17 = %115, %arg18 = %119) -> (vector<8x2xf32>, f32, f32, f32, vector<1x8xf32>, vector<1x8xf32>, vector<1x8xf32>)  : i32 {
        %137 = vector.broadcast %arg13 : f32 to vector<8x2xf32>
        %138 = arith.mulf %64, %137 : vector<8x2xf32>
        %139 = vector.broadcast %arg14 : f32 to vector<8x2xf32>
        %140 = arith.mulf %66, %139 : vector<8x2xf32>
        %141 = arith.addf %138, %140 : vector<8x2xf32>
        %142 = vector.broadcast %arg15 : f32 to vector<8x2xf32>
        %143 = arith.mulf %68, %142 : vector<8x2xf32>
        %144 = arith.addf %141, %143 : vector<8x2xf32>
        %145 = arith.mulf %arg13, %arg13 : f32
        %146 = arith.mulf %arg14, %arg14 : f32
        %147 = arith.addf %145, %146 : f32
        %148 = arith.mulf %arg15, %arg15 : f32
        %149 = arith.addf %147, %148 : f32
        %cst_77 = arith.constant 2.000000e+00 : f32
        %150 = vector.broadcast %cst_77 : f32 to vector<8x2xf32>
        %151 = arith.mulf %150, %144 : vector<8x2xf32>
        %152 = arith.subf %73, %151 : vector<8x2xf32>
        %153 = vector.broadcast %149 : f32 to vector<8x2xf32>
        %154 = arith.addf %152, %153 : vector<8x2xf32>
        %155 = arith.minimumf %arg12, %154 : vector<8x2xf32>
        %156 = vector.shape_cast %155 : vector<8x2xf32> to vector<1x8x2xf32>
        %cst_78 = arith.constant dense<0xFF800000> : vector<1xf32>
        %157 = vector.multi_reduction <maximumf>, %156, %cst_78 [1, 2] : vector<1x8x2xf32> to vector<1xf32>
        %158 = vector.shape_cast %157 : vector<1xf32> to vector<1x1x1xf32>
        %159 = vector.extract %158[0, 0, 0] : f32 from vector<1x1x1xf32>
        %160 = vector.broadcast %159 : f32 to vector<8x2xf32>
        %161 = arith.cmpf oeq, %155, %160 : vector<8x2xf32>
        %c16_i32_79 = arith.constant 16 : i32
        %162 = vector.broadcast %c16_i32_79 : i32 to vector<8x2xi32>
        %163 = arith.select %161, %78, %162 : vector<8x2xi1>, vector<8x2xi32>
        %164 = vector.shape_cast %163 : vector<8x2xi32> to vector<1x8x2xi32>
        %cst_80 = arith.constant dense<2147483647> : vector<1xi32>
        %165 = vector.multi_reduction <minsi>, %164, %cst_80 [1, 2] : vector<1x8x2xi32> to vector<1xi32>
        %166 = vector.shape_cast %165 : vector<1xi32> to vector<1x1x1xi32>
        %167 = vector.extract %166[0, 0, 0] : i32 from vector<1x1x1xi32>
        %c0_81 = arith.constant 0 : index
        %168 = arith.index_cast %167 : i32 to index
        %c0_82 = arith.constant 0 : index
        %169 = vector.load %arg3[%c0_81, %168, %c0_82] : memref<1x16x3xf32, #tpu.memory_space<vmem>>, vector<1x1x3xf32>
        %170 = vector.shape_cast %169 : vector<1x1x3xf32> to vector<1x3xf32>
        %c0_i32_83 = arith.constant 0 : i32
        %171 = vector.broadcast %c0_i32_83 : i32 to vector<1x3xi32>
        %172 = arith.cmpi eq, %80, %171 : vector<1x3xi32>
        %cst_84 = arith.constant 0.000000e+00 : f32
        %173 = vector.broadcast %cst_84 : f32 to vector<1x3xf32>
        %174 = arith.select %172, %170, %173 : vector<1x3xi1>, vector<1x3xf32>
        %175 = vector.shape_cast %174 : vector<1x3xf32> to vector<1x1x3xf32>
        %cst_85 = arith.constant dense<0.000000e+00> : vector<1xf32>
        %176 = vector.multi_reduction <add>, %175, %cst_85 [1, 2] : vector<1x1x3xf32> to vector<1xf32>
        %177 = vector.shape_cast %176 : vector<1xf32> to vector<1x1x1xf32>
        %178 = vector.extract %177[0, 0, 0] : f32 from vector<1x1x1xf32>
        %c1_i32_86 = arith.constant 1 : i32
        %179 = vector.broadcast %c1_i32_86 : i32 to vector<1x3xi32>
        %180 = arith.cmpi eq, %80, %179 : vector<1x3xi32>
        %cst_87 = arith.constant 0.000000e+00 : f32
        %181 = vector.broadcast %cst_87 : f32 to vector<1x3xf32>
        %182 = arith.select %180, %170, %181 : vector<1x3xi1>, vector<1x3xf32>
        %183 = vector.shape_cast %182 : vector<1x3xf32> to vector<1x1x3xf32>
        %cst_88 = arith.constant dense<0.000000e+00> : vector<1xf32>
        %184 = vector.multi_reduction <add>, %183, %cst_88 [1, 2] : vector<1x1x3xf32> to vector<1xf32>
        %185 = vector.shape_cast %184 : vector<1xf32> to vector<1x1x1xf32>
        %186 = vector.extract %185[0, 0, 0] : f32 from vector<1x1x1xf32>
        %c2_i32_89 = arith.constant 2 : i32
        %187 = vector.broadcast %c2_i32_89 : i32 to vector<1x3xi32>
        %188 = arith.cmpi eq, %80, %187 : vector<1x3xi32>
        %cst_90 = arith.constant 0.000000e+00 : f32
        %189 = vector.broadcast %cst_90 : f32 to vector<1x3xf32>
        %190 = arith.select %188, %170, %189 : vector<1x3xi1>, vector<1x3xf32>
        %191 = vector.shape_cast %190 : vector<1x3xf32> to vector<1x1x3xf32>
        %cst_91 = arith.constant dense<0.000000e+00> : vector<1xf32>
        %192 = vector.multi_reduction <add>, %191, %cst_91 [1, 2] : vector<1x1x3xf32> to vector<1xf32>
        %193 = vector.shape_cast %192 : vector<1xf32> to vector<1x1x1xf32>
        %194 = vector.extract %193[0, 0, 0] : f32 from vector<1x1x1xf32>
        %195 = vector.broadcast %arg11 : i32 to vector<1x8xi32>
        %196 = arith.cmpi eq, %79, %195 : vector<1x8xi32>
        %197 = vector.broadcast %178 : f32 to vector<1x8xf32>
        %198 = arith.select %196, %197, %arg16 : vector<1x8xi1>, vector<1x8xf32>
        %199 = vector.broadcast %186 : f32 to vector<1x8xf32>
        %200 = arith.select %196, %199, %arg17 : vector<1x8xi1>, vector<1x8xf32>
        %201 = vector.broadcast %194 : f32 to vector<1x8xf32>
        %202 = arith.select %196, %201, %arg18 : vector<1x8xi1>, vector<1x8xf32>
        scf.yield %155, %178, %186, %194, %198, %200, %202 : vector<8x2xf32>, f32, f32, f32, vector<1x8xf32>, vector<1x8xf32>, vector<1x8xf32>
      }
      %c7_i32_54 = arith.constant 7 : i32
      %c0_55 = arith.constant 0 : index
      %c0_56 = arith.constant 0 : index
      %123 = vector.load %arg7[%c0_55, %c0_56] : memref<3x8xf32, #tpu.memory_space<vmem>>, vector<1x8xf32>
      tpu.vector_store %arg7[%c0_55, %c0_56], %122#4 {strides = array<i32>} : memref<3x8xf32, #tpu.memory_space<vmem>>, vector<1x8xf32>,
      %c1_57 = arith.constant 1 : index
      %c0_58 = arith.constant 0 : index
      %124 = vector.load %arg7[%c1_57, %c0_58] : memref<3x8xf32, #tpu.memory_space<vmem>>, vector<1x8xf32>
      tpu.vector_store %arg7[%c1_57, %c0_58], %122#5 {strides = array<i32>} : memref<3x8xf32, #tpu.memory_space<vmem>>, vector<1x8xf32>,
      %c2_59 = arith.constant 2 : index
      %c0_60 = arith.constant 0 : index
      %125 = vector.load %arg7[%c2_59, %c0_60] : memref<3x8xf32, #tpu.memory_space<vmem>>, vector<1x8xf32>
      tpu.vector_store %arg7[%c2_59, %c0_60], %122#6 {strides = array<i32>} : memref<3x8xf32, #tpu.memory_space<vmem>>, vector<1x8xf32>,
      %c0_61 = arith.constant 0 : index
      %c0_62 = arith.constant 0 : index
      %126 = vector.load %arg7[%c0_61, %c0_62] : memref<3x8xf32, #tpu.memory_space<vmem>>, vector<3x8xf32>
      %c0_63 = arith.constant 0 : index
      %c0_64 = arith.constant 0 : index
      %c0_65 = arith.constant 0 : index
      %127 = vector.load %arg5[%c0_63, %c0_64, %c0_65] : memref<1x3x8xf32, #tpu.memory_space<vmem>>, vector<1x3x8xf32>
      %128 = vector.shape_cast %127 : vector<1x3x8xf32> to vector<3x8xf32>
      %129 = vector.shape_cast %126 : vector<3x8xf32> to vector<1x3x8xf32>
      tpu.vector_store %arg5[%c0_63, %c0_64, %c0_65], %129 {strides = array<i32>} : memref<1x3x8xf32, #tpu.memory_space<vmem>>, vector<1x3x8xf32>,
      %cst_66 = arith.constant -3.000000e+38 : f32
      %130 = vector.broadcast %cst_66 : f32 to vector<4x8xf32>
      %c0_67 = arith.constant 0 : index
      %c0_68 = arith.constant 0 : index
      %131 = vector.load %arg8[%c0_67, %c0_68] : memref<4x8xf32, #tpu.memory_space<vmem>>, vector<4x8xf32>
      tpu.vector_store %arg8[%c0_67, %c0_68], %130 {strides = array<i32>} : memref<4x8xf32, #tpu.memory_space<vmem>>, vector<4x8xf32>,
      %cst_69 = arith.constant 0.000000e+00 : f32
      %132 = vector.broadcast %cst_69 : f32 to vector<1x8xf32>
      %c0_70 = arith.constant 0 : index
      %c0_71 = arith.constant 0 : index
      %133 = vector.load %arg9[%c0_70, %c0_71] : memref<1x8xf32, #tpu.memory_space<vmem>>, vector<1x8xf32>
      tpu.vector_store %arg9[%c0_70, %c0_71], %132 {strides = array<i32>} : memref<1x8xf32, #tpu.memory_space<vmem>>, vector<1x8xf32>,
      %c0_72 = arith.constant 0 : index
      %c0_73 = arith.constant 0 : index
      %c0_74 = arith.constant 0 : index
      %134 = vector.load %arg4[%c0_72, %c0_73, %c0_74] : memref<1x4x16xf32, #tpu.memory_space<vmem>>, vector<1x4x1xf32>
      %135 = vector.shape_cast %134 : vector<1x4x1xf32> to vector<4x1xf32>
      %c0_75 = arith.constant 0 : index
      %c0_76 = arith.constant 0 : index
      %136 = vector.load %arg10[%c0_75, %c0_76] : memref<4x1xf32, #tpu.memory_space<vmem>>, vector<4x1xf32>
      tpu.vector_store %arg10[%c0_75, %c0_76], %135 {strides = array<i32>} : memref<4x1xf32, #tpu.memory_space<vmem>>, vector<4x1xf32>,
    } else {
    }
    %c16_i32 = arith.constant 16 : i32
    %3 = arith.muli %arg1, %c16_i32 : i32
    %4 = tpu.assume_multiple %3, 16 : i32
    %c0 = arith.constant 0 : index
    %5 = arith.index_cast %4 : i32 to index
    %c0_1 = arith.constant 0 : index
    %6 = vector.load %arg3[%c0, %5, %c0_1] : memref<1x16x3xf32, #tpu.memory_space<vmem>>, vector<1x16x3xf32>
    %7 = vector.shape_cast %6 : vector<1x16x3xf32> to vector<16x3xf32>
    %8 = arith.mulf %7, %7 : vector<16x3xf32>
    %cst = arith.constant dense<0.000000e+00> : vector<16xf32>
    %9 = vector.multi_reduction <add>, %8, %cst [1] : vector<16x3xf32> to vector<16xf32>
    %10 = vector.shape_cast %9 : vector<16xf32> to vector<16x1xf32>
    %c0_2 = arith.constant 0 : index
    %c0_3 = arith.constant 0 : index
    %c0_4 = arith.constant 0 : index
    %11 = vector.load %arg4[%c0_2, %c0_3, %c0_4] : memref<1x4x16xf32, #tpu.memory_space<vmem>>, vector<1x4x16xf32>
    %12 = vector.shape_cast %11 : vector<1x4x16xf32> to vector<4x16xf32>
    %13 = tpu.iota {dimensions = array<i32: 0>} : vector<16x16xi32>
    %14 = tpu.iota {dimensions = array<i32: 1>} : vector<16x16xi32>
    %15 = arith.cmpi sle, %14, %13 : vector<16x16xi32>
    %16 = arith.extui %15 : vector<16x16xi1> to vector<16x16xi32>
    %17 = arith.sitofp %16 : vector<16x16xi32> to vector<16x16xf32>
    %18 = arith.truncf %17 : vector<16x16xf32> to vector<16x16xbf16>
    %c0_5 = arith.constant 0 : index
    %c0_6 = arith.constant 0 : index
    %19 = vector.load %arg7[%c0_5, %c0_6] : memref<3x8xf32, #tpu.memory_space<vmem>>, vector<3x8xf32>
    %20 = arith.mulf %19, %19 : vector<3x8xf32>
    %cst_7 = arith.constant dense<0.000000e+00> : vector<8xf32>
    %21 = vector.multi_reduction <add>, %20, %cst_7 [0] : vector<3x8xf32> to vector<8xf32>
    %22 = vector.shape_cast %21 : vector<8xf32> to vector<1x8xf32>
    %cst_8 = arith.constant dense<0.000000e+00> : vector<16x8xf32>
    %23 = tpu.matmul %7, %19, %cst_8 {dimension_numbers = #tpu.dot_dimension_numbers<[1], [0], [0], [1], [0, 0, 1, 1], [], []>, precision = #tpu.contract_precision<fp32>} : vector<16x3xf32>, vector<3x8xf32>, vector<16x8xf32> -> vector<16x8xf32>
    %24 = vector.broadcast %10 : vector<16x1xf32> to vector<16x8xf32>
    %25 = vector.broadcast %22 : vector<1x8xf32> to vector<16x8xf32>
    %26 = arith.addf %24, %25 : vector<16x8xf32>
    %cst_9 = arith.constant 2.000000e+00 : f32
    %27 = vector.broadcast %cst_9 : f32 to vector<16x8xf32>
    %28 = arith.mulf %27, %23 : vector<16x8xf32>
    %29 = arith.subf %26, %28 : vector<16x8xf32>
    %cst_10 = arith.constant 2.025000e-01 : f32
    %30 = vector.broadcast %cst_10 : f32 to vector<16x8xf32>
    %31 = arith.cmpf olt, %29, %30 : vector<16x8xf32>
    %c0_11 = arith.constant 0 : index
    %c0_12 = arith.constant 0 : index
    %32 = vector.load %arg9[%c0_11, %c0_12] : memref<1x8xf32, #tpu.memory_space<vmem>>, vector<1x8xf32>
    %33 = arith.extui %31 : vector<16x8xi1> to vector<16x8xi32>
    %34 = arith.sitofp %33 : vector<16x8xi32> to vector<16x8xf32>
    %35 = arith.truncf %34 : vector<16x8xf32> to vector<16x8xbf16>
    %cst_13 = arith.constant dense<0.000000e+00> : vector<16x8xf32>
    %36 = tpu.matmul %18, %35, %cst_13 {dimension_numbers = #tpu.dot_dimension_numbers<[1], [0], [0], [1], [0, 0, 1, 1], [], []>} : vector<16x16xbf16>, vector<16x8xbf16>, vector<16x8xf32> -> vector<16x8xf32>
    %37 = vector.broadcast %32 : vector<1x8xf32> to vector<16x8xf32>
    %38 = arith.addf %37, %36 : vector<16x8xf32>
    %cst_14 = arith.constant 4.000000e+00 : f32
    %39 = vector.broadcast %cst_14 : f32 to vector<16x8xf32>
    %40 = arith.cmpf ole, %38, %39 : vector<16x8xf32>
    %41 = arith.andi %31, %40 : vector<16x8xi1>
    %42 = vector.shape_cast %41 : vector<16x8xi1> to vector<1x16x8xi1>
    %43 = vector.shape_cast %12 : vector<4x16xf32> to vector<4x16x1xf32>
    %cst_15 = arith.constant -3.000000e+38 : f32
    %44 = vector.shape_cast %42 : vector<1x16x8xi1> to vector<1x16x8xi1>
    %45 = vector.broadcast %44 : vector<1x16x8xi1> to vector<4x16x8xi1>
    %46 = vector.shape_cast %43 : vector<4x16x1xf32> to vector<4x16x1xf32>
    %47 = vector.broadcast %46 : vector<4x16x1xf32> to vector<4x16x8xf32>
    %48 = vector.broadcast %cst_15 : f32 to vector<4x16x8xf32>
    %49 = arith.select %45, %47, %48 : vector<4x16x8xi1>, vector<4x16x8xf32>
    %cst_16 = arith.constant dense<0xFF800000> : vector<4x8xf32>
    %50 = vector.multi_reduction <maximumf>, %49, %cst_16 [1] : vector<4x16x8xf32> to vector<4x8xf32>
    %c0_17 = arith.constant 0 : index
    %c0_18 = arith.constant 0 : index
    %51 = vector.load %arg8[%c0_17, %c0_18] : memref<4x8xf32, #tpu.memory_space<vmem>>, vector<4x8xf32>
    %52 = arith.maximumf %51, %50 : vector<4x8xf32>
    %c0_19 = arith.constant 0 : index
    %c0_20 = arith.constant 0 : index
    %53 = vector.load %arg8[%c0_19, %c0_20] : memref<4x8xf32, #tpu.memory_space<vmem>>, vector<4x8xf32>
    tpu.vector_store %arg8[%c0_19, %c0_20], %52 {strides = array<i32>} : memref<4x8xf32, #tpu.memory_space<vmem>>, vector<4x8xf32>,
    %54 = arith.extui %31 : vector<16x8xi1> to vector<16x8xi32>
    %55 = arith.sitofp %54 : vector<16x8xi32> to vector<16x8xf32>
    %cst_21 = arith.constant dense<0.000000e+00> : vector<8xf32>
    %56 = vector.multi_reduction <add>, %55, %cst_21 [0] : vector<16x8xf32> to vector<8xf32>
    %57 = vector.shape_cast %56 : vector<8xf32> to vector<1x8xf32>
    %58 = arith.addf %32, %57 : vector<1x8xf32>
    %c0_22 = arith.constant 0 : index
    %c0_23 = arith.constant 0 : index
    %59 = vector.load %arg9[%c0_22, %c0_23] : memref<1x8xf32, #tpu.memory_space<vmem>>, vector<1x8xf32>
    tpu.vector_store %arg9[%c0_22, %c0_23], %58 {strides = array<i32>} : memref<1x8xf32, #tpu.memory_space<vmem>>, vector<1x8xf32>,
    %c0_i32_24 = arith.constant 0 : i32
    %60 = arith.cmpi eq, %arg1, %c0_i32_24 : i32
    %61 = arith.extui %60 : i1 to i32
    %c0_i32_25 = arith.constant 0 : i32
    %62 = arith.cmpi ne, %61, %c0_i32_25 : i32
    scf.if %62 {
      %c0_26 = arith.constant 0 : index
      %c0_27 = arith.constant 0 : index
      %63 = vector.load %arg9[%c0_26, %c0_27] : memref<1x8xf32, #tpu.memory_space<vmem>>, vector<1x8xf32>
      %cst_28 = arith.constant 0.000000e+00 : f32
      %64 = vector.broadcast %cst_28 : f32 to vector<1x8xf32>
      %65 = arith.cmpf ogt, %63, %64 : vector<1x8xf32>
      %c0_29 = arith.constant 0 : index
      %c0_30 = arith.constant 0 : index
      %66 = vector.load %arg8[%c0_29, %c0_30] : memref<4x8xf32, #tpu.memory_space<vmem>>, vector<4x8xf32>
      %c0_31 = arith.constant 0 : index
      %c0_32 = arith.constant 0 : index
      %67 = vector.load %arg10[%c0_31, %c0_32] : memref<4x1xf32, #tpu.memory_space<vmem>>, vector<4x1xf32>
      %68 = vector.shape_cast %65 : vector<1x8xi1> to vector<1x8xi1>
      %69 = vector.broadcast %68 : vector<1x8xi1> to vector<4x8xi1>
      %70 = vector.shape_cast %67 : vector<4x1xf32> to vector<4x1xf32>
      %71 = vector.broadcast %70 : vector<4x1xf32> to vector<4x8xf32>
      %72 = arith.select %69, %66, %71 : vector<4x8xi1>, vector<4x8xf32>
      %c0_33 = arith.constant 0 : index
      %c0_34 = arith.constant 0 : index
      %c0_35 = arith.constant 0 : index
      %73 = vector.load %arg6[%c0_33, %c0_34, %c0_35] : memref<1x4x8xf32, #tpu.memory_space<vmem>>, vector<1x4x8xf32>
      %74 = vector.shape_cast %73 : vector<1x4x8xf32> to vector<4x8xf32>
      %75 = vector.shape_cast %72 : vector<4x8xf32> to vector<1x4x8xf32>
      tpu.vector_store %arg6[%c0_33, %c0_34, %c0_35], %75 {strides = array<i32>} : memref<1x4x8xf32, #tpu.memory_space<vmem>>, vector<1x4x8xf32>,
    } else {
    }
    return
  }
  func.func @transform_0(%arg0: i32, %arg1: i32) -> (i32, i32, i32, i32) {
    %c0_i32 = arith.constant 0 : i32
    %c0_i32_0 = arith.constant 0 : i32
    %c0_i32_1 = arith.constant 0 : i32
    %c0_i32_2 = arith.constant 0 : i32
    return %arg0, %c0_i32, %c0_i32_0, %c0_i32_1 : i32, i32, i32, i32
  }
  func.func @transform_1(%arg0: i32, %arg1: i32) -> (i32, i32, i32) {
    %c0_i32 = arith.constant 0 : i32
    %c0_i32_0 = arith.constant 0 : i32
    %c0_i32_1 = arith.constant 0 : i32
    return %arg0, %c0_i32, %c0_i32_0 : i32, i32, i32
  }
  func.func @transform_2(%arg0: i32, %arg1: i32) -> (i32, i32, i32) {
    %c0_i32 = arith.constant 0 : i32
    %c0_i32_0 = arith.constant 0 : i32
    return %arg0, %c0_i32, %arg1 : i32, i32, i32
  }
  func.func @transform_3(%arg0: i32, %arg1: i32) -> (i32, i32, i32) {
    %c0_i32 = arith.constant 0 : i32
    %c0_i32_0 = arith.constant 0 : i32
    %c0_i32_1 = arith.constant 0 : i32
    return %arg0, %c0_i32, %c0_i32_0 : i32, i32, i32
  }
  func.func @transform_4(%arg0: i32, %arg1: i32) -> (i32, i32, i32) {
    %c0_i32 = arith.constant 0 : i32
    %c0_i32_0 = arith.constant 0 : i32
    %c0_i32_1 = arith.constant 0 : i32
    return %arg0, %c0_i32, %c0_i32_0 : i32, i32, i32
  }
}

</mosaic_0001>

<bundles_post_ra>
// kernel: tpu_custom_call.1
= control target key start
LH: loop header
LB: loop body
LE: loop exit
PB: predicated region body
PF: predicated region fallthrough
CT: control target
= control target key end

     0   :  { %10 = vsyncpa [#allocation7], 0  ;;  %s2126_s0 = inlined_call_operand.vmem [shape: f32[2,3,8,2], index: 0, kind: input, shape index: {}]   ;;  %s2127_s1 = inlined_call_operand.vmem [shape: f32[2,16,3], index: 1, kind: input, shape index: {}]   ;;  %s2128_s2 = inlined_call_operand.vmem [shape: f32[2,4,16], index: 2, kind: input, shape index: {}]   ;;  %s2129_s3 = inlined_call_operand.vmem [shape: f32[2,3,8], index: 3, kind: output, shape index: {0}]   ;;  %s2130_s4 = inlined_call_operand.hbm [shape: f32[2,4,8], index: 4, kind: output, shape index: {1}]  }
   0x1   :  { %12 = vsyncpa [#allocation7 + $0x1], 0  ;;  %s1781_s15 = smov 0   ;;  %s1783_s16 = smov 0  }
   0x2   :  { %s1785_s17 = smov 0   ;;  %s1787_s18 = smov 0  }
   0x3   :  { %s1789_s19 = smov 0   ;;  %s1791_s20 = smov 0  }
   0x4 LB: > { %s1372_s21 = sadd.s32 4294967295, %s1716_s20   ;;  %s1373_s22 = sadd.s32 4294967294, %s1716_s20   ;;  %s1716_s20 = sphi %s1791_s20, %s18_s20   ;;  %s1712_s19 = sphi %s1789_s19, %s2148_s19   ;;  %s1708_s18 = sphi %s1787_s18, %s2147_s18   ;;  %s1704_s17 = sphi %s1785_s17, %s2146_s17   ;;  %s1700_s16 = sphi %s1783_s16, %s2145_s16   ;;  %s1696_s15 = sphi %s1781_s15, %s2144_s15  }
   0x5   : > { %s30_s23 = sadd.s32 1, %s1712_s19  ;;  %s143_s24 = sadd.s32 1, %s1704_s17 }
   0x6   : > { %p32_p0 = scmp.ge.s32.totalorder %s30_s23, 2  ;;  %p153_p1 = scmp.ne.s32.totalorder %s1704_s17, %s1700_s16 }
   0x7   : > { %p154_p2 = scmp.eq.s32.totalorder %s1372_s21, 1  ;;  %p159_p3 = scmp.ne.s32.totalorder %s1700_s16, %s1696_s15 }
   0x8   : > { %s2150_s23 = smov (%p32_p0, %s30_s23), 0  ;;  %p160_p5 = scmp.eq.s32.totalorder %s1373_s22, 1 }
   0x9   : > { %p1821_p4 = por %p154_p2, %p153_p1  ;;  %s140_s26 = ssub.s32 %s1712_s19, %s2150_s23 }
   0xa   : > { %p1376_p6 = scmp.ge.s32.totalorder %s1716_s20, 1  ;;  %p141_p7 = scmp.eq.s32.totalorder %s140_s26, 0 }
   0xb   : > { %p1828_p8 = por %p160_p5, %p159_p3  ;;  %p204_p9 = scmp.lt.s32.totalorder %s1716_s20, 3 }
   0xc   : > { %s1834_s28 = scalar_select %p141_p7, %s1704_s17, %s143_s24  }
   0xd   : > { %p205_p10 = pnand %p1376_p6, %p204_p9 }
   0xe   : > { %p246_p11 = scmp.lt.s32.totalorder (!%p205_p10), %s1708_s18, 1  ;;  %v282_v0 = vlaneseq (!%p205_p10)  ;;  %vm291_vm3 = vcmask (!%p205_p10), 16384   ;;  %v1915_v47 = vmov (!%p205_p10), 1e+10   ;;  %s1917_s10 = smov (!%p205_p10), 1  }
   0xf   : > { %208 = sbr.rel (%p205_p10) target bundleno = 1559 (0x617), region = 32 }
  0x10   : > { %v1838_v1 = vshrl.u32 (!%p205_p10), %v282_v0, 7  ;;  %v1840_v2 = vand.u32 (!%p205_p10), 127, %v282_v0 }
  0x12   : > { %v284_v3 = vmul.u32 (!%p205_p10), 2, %v1838_v1  ;;  %vm314_vm0 = vcmp.eq.s32.totalorder (!%p205_p10), %v1840_v2, 2  ;;  %vm289_vm1 = vcmp.eq.s32.totalorder (!%p205_p10), %v1840_v2, 0  ;;  %vm302_vm2 = vcmp.eq.s32.totalorder (!%p205_p10), %v1840_v2, 1 }
  0x14   : > { %v1862_v4 = vadd.s32 (!%p205_p10), %v1840_v2, %v284_v3 }
  0x16   : > { %s247_s29 = scalar_select %p246_p11, %s1708_s18, 1 }
  0x18   : > { %s1396_s30 = sshll.u32 %s247_s29, 4  ;;  %s1381_s5 = sshll.u32 %s247_s29, 2 }
  0x19   : > { %s1849_s8 = scalar_lea.vmem %s2127_s1, %s1396_s30  ;;  %s1854_s11 = scalar_lea.vmem %s2128_s2, %s1381_s5 }
  0x1a   : > { %s1859_s14 = scalar_lea.vmem %s2129_s3, %s1381_s5  ;;  %v288_v5 = vld [vmem:[%s1849_s8] sm:$0x1]  ;;  %s1463_s21 = smul.u32 24, %s247_s29 }
  0x1b   : > { %v315_v6 = vsel %vm314_vm0, %v288_v5, 0.0  ;;  %v290_v7 = vsel %vm289_vm1, %v288_v5, 0.0  ;;  %v303_v8 = vsel %vm302_vm2, %v288_v5, 0.0  ;;  %s243_s29 = sand.u32 1, %s1700_s16  }
  0x1c   : > { %v316_v9 = vsel %vm291_vm3, %v315_v6, 0.0  ;;  %s250_s26 = scalar_lea.vmem %s2126_s0, %s1463_s21  ;;  %v292_v10 = vsel %vm291_vm3, %v290_v7, 0.0  ;;  %v304_v17 = vsel %vm291_vm3, %v303_v8, 0.0  ;;  %s1894_s30 = sshll.u32 %s243_s29, 2 }
  0x1d   : > { %317 = vadd.xlane.f32.xlu1 %v316_v9  ;;  %v1876_v11 = vld [vmem:[%s250_s26] sm:$0xff]  ;;  %v1878_v12 = vld [vmem:[%s250_s26 + $0x8] sm:$0xff]  ;;  %v1880_v13 = vld [vmem:[%s250_s26 + $0x10] sm:$0xff]  ;;  %293 = vadd.xlane.f32.xlu0 %v292_v10  ;;  %s245_s9 = scalar_lea.vmem [#allocation6], %s1894_s30 }
  0x1e   : > { %v277_v14 = vmul.f32 %v1876_v11, %v1876_v11  ;;  %v278_v15 = vmul.f32 %v1878_v12, %v1878_v12  ;;  %v280_v16 = vmul.f32 %v1880_v13, %v1880_v13 }
  0x20   : > { %v279_v18 = vadd.f32 %v278_v15, %v277_v14 }
  0x21   : > { %305 = vadd.xlane.f32.xlu0 %v304_v17 }
  0x22   : > { %v1889_v19 = vadd.f32 %v280_v16, %v279_v18 }
  0xaa   : > { %v318_v20 = vpop.xlane.xlu1 %317  ;;  %v294_v21 = vpop.xlane.xlu0 %293 }
  0xab   : > { %v319_v22 = vrot.slane %v318_v20, 4  ;;  %v295_v23 = vrot.slane %v294_v21, 4 }
  0xad   : > { %v320_v24 = vadd.f32 %v319_v22, %v318_v20  ;;  %v296_v25 = vadd.f32 %v295_v23, %v294_v21 }
  0xae   : > { %v306_v26 = vpop.xlane.xlu0 %305 }
  0xaf   : > { %v321_v27 = vrot.slane %v320_v24, 2  ;;  %v297_v28 = vrot.slane %v296_v25, 2  ;;  %v307_v29 = vrot.slane %v306_v26, 4 }
  0xb1   : > { %v308_v30 = vadd.f32 %v307_v29, %v306_v26  ;;  %v298_v31 = vadd.f32 %v297_v28, %v296_v25  ;;  %v322_v32 = vadd.f32 %v321_v27, %v320_v24 }
  0xb3   : > { %v309_v33 = vrot.slane %v308_v30, 2  ;;  %v299_v34 = vrot.slane %v298_v31, 1  ;;  %v323_v37 = vrot.slane %v322_v32, 1 }
  0xb5   : > { %v310_v35 = vadd.f32 %v309_v33, %v308_v30  ;;  %v300_v36 = vadd.f32 %v299_v34, %v298_v31  ;;  %v324_v40 = vadd.f32 %v323_v37, %v322_v32 }
  0xb7   : > { %1464 = vpush %v300_v36  ;;  %v311_v38 = vrot.slane %v310_v35, 1 }
  0xb9   : > { %v312_v39 = vadd.f32 %v311_v38, %v310_v35 }
  0xbb   : > { %1466 = vpush %v312_v39 }
  0xbc   : > { %1468 = vpush %v324_v40 }
  0xe8   : > { %s1465_s5 = spop %1464  }
  0xe9   : > { %v326_v41 = vstv %s1465_s5 }
  0xea   : > { %v327_v42 = vsel %vm289_vm1, %v326_v41, 0.0  }
  0xec   : > { %s1467_s6 = spop %1466  }
  0xed   : > { %v328_v43 = vstv %s1467_s6  ;;  %s1469_s7 = spop %1468  }
  0xee   : > { %v329_v44 = vsel %vm289_vm1, %v328_v43, 0.0   ;;  %v330_v45 = vstv %s1469_s7 }
  0xef   : > { %v331_v46 = vsel %vm289_vm1, %v330_v45, 0.0  }
  0xf0 LB: >> { %v347_v48 = vstv %s1736_s6  ;;  %v345_v49 = vstv %s1740_s5  ;;  %v350_v51 = vstv %s1732_s7  ;;  %s353_s12 = smul.f32 %s1740_s5, %s1740_s5  ;;  %vm363_vm4 = vcmask 15360   ;;  %s1748_s10 = sphi %s1917_s10, %s337_s10   ;;  %v1744_v47 = vphi %v1915_v47, %v1939_v47   ;;  %s1740_s5 = sphi %s1465_s5, %s1475_s5   ;;  %s1736_s6 = sphi %s1467_s6, %s1477_s6   ;;  %s1732_s7 = sphi %s1469_s7, %s1479_s7   ;;  %v1728_v42 = vphi %v327_v42, %v2135_v42   ;;  %v1724_v44 = vphi %v329_v44, %v2134_v44   ;;  %v1720_v46 = vphi %v331_v46, %v2133_v46  }
  0xf1   : >> { %v348_v50 = vmul.f32 %v1878_v12, %v347_v48  ;;  %v346_v52 = vmul.f32 %v345_v49, %v1876_v11  ;;  %v351_v53 = vmul.f32 %v1880_v13, %v350_v51  ;;  %s354_s13 = smul.f32 %s1736_s6, %s1736_s6 }
  0xf2   : >> { %s356_s21 = smul.f32 %s1732_s7, %s1732_s7 }
  0xf3   : >> { %v349_v54 = vadd.f32 %v348_v50, %v346_v52  ;;  %s355_s22 = sadd.f32 %s354_s13, %s353_s12 }
  0xf5   : >> { %v352_v55 = vadd.f32 %v351_v53, %v349_v54  ;;  %s357_s24 = sadd.f32 %s356_s21, %s355_s22 }
  0xf7   : >> { %v358_v56 = vmul.f32 2.0, %v352_v55  ;;  %v360_v57 = vstv %s357_s24 }
  0xf9   : >> { %v359_v58 = vsub.f32 %v1889_v19, %v358_v56 }
  0xfb   : >> { %v361_v59 = vadd.f32 %v360_v57, %v359_v58 }
  0xfd   : >> { %v1939_v47 = vmin.f32 %v1744_v47, %v361_v59  }
  0xff   : >> { %v364_v60 = vsel %vm363_vm4, %v1939_v47, -inf }
 0x100   : >> { %365 = vmax.xlane.f32.xlu0 %v364_v60 }
 0x18d   : >> { %v366_v61 = vpop.xlane.xlu0 %365 }
 0x18e   : >> { %v367_v62 = vrot.slane %v366_v61, 4 }
 0x190   : >> { %v368_v63 = vmax.f32 %v366_v61, %v367_v62 }
 0x192   : >> { %v369_v0 = vrot.slane %v368_v63, 2 }
 0x194   : >> { %v370_v3 = vmax.f32 %v368_v63, %v369_v0  ;;  %v437_v63 = vstv %s1748_s10  ;;  %s337_s10 = sadd.s32 1, %s1748_s10  }
 0x195   : >> { %vm438_vm10 = vcmp.eq.s32.totalorder %v1840_v2, %v437_v63  ;;  %p334_p12 = scmp.ge.s32.totalorder %s337_s10, 8  }
 0x196   : >> { %v371_v5 = vrot.slane %v370_v3, 1  ;;  %vm445_vm11 = vcmask (%p334_p12), 57344   ;;  %vm464_vm12 = vcmask (%p334_p12), 23552   ;;  %vm500_vm13 = vcmask (%p334_p12), 1042432   ;;  %s1755_s13 = smov (%p334_p12), [#allocation6]  }
 0x197   : > { %vm450_vm14 = vcmask (%p334_p12), 59392   ;;  %vm1751_vm15 = vmmov (%p334_p12), 0   ;;  %s1610_s21 = sshll.u32 (%p334_p12), %s1755_s13, 4  ;;  %s1611_s21 = int_to_ptr.vmem [resolvable:$false] %s1610_s21 }
 0x198   : >> { %v372_v6 = vmax.f32 %v370_v3, %v371_v5  ;;  %s1612_s22 = scalar_lea.vmem (%p334_p12), %s1611_s21, 128 }
 0x19a   : >> { %1470 = vpush %v372_v6 }
 0x1cb   : >> { %s1471_s26 = spop %1470 }
 0x1cc   : >> { %v374_v7 = vstv %s1471_s26 }
 0x1cd   : >> { %vm375_vm5 = vcmp.eq.f32.partialorder %v1939_v47, %v374_v7 }
 0x1ce   : >> { %v376_v8 = vsel %vm375_vm5, %v1862_v4, 16 }
 0x1cf   : >> { %v377_v9 = vsel %vm363_vm4, %v376_v8, 2147483647 }
 0x1d0   : >> { %v379_v10 = vshra.s32 %v377_v9, 16  ;;  %v378_v15 = vand.u32 65535, %v377_v9  ;;  %v460_v9 = vld [vmem:[%s1849_s8] sm:$0xff] (%p334_p12) }
 0x1d2   : >> { %v381_v14 = vcvt.s32.f32 %v379_v10  ;;  %v380_v17 = vcvt.s32.f32 %v378_v15  ;;  %v461_v10 = vld [vmem:[%s1849_s8 + $0x8] sm:$0xff] (%p334_p12) }
 0x1d3   : > { %v498_v15 = vsel (%p334_p12), %vm464_vm12, %v461_v10, 0 }
 0x1d4   : >> { %382 = vmin.xlane.f32.xlu0 %v381_v14 }
 0x261   : >> { %v383_v16 = vpop.xlane.xlu0 %382 }
 0x262   : >> { %vm384_vm6 = vcmp.eq.f32.partialorder %v381_v14, %v383_v16  ;;  %v389_v20 = vcvt.f32.s32 %v383_v16  ;;  %v495_v14 = vsel (%p334_p12), %vm464_vm12, %v460_v9, 0  ;;  %v462_v16 = vmul.f32 (%p334_p12), %v460_v9, %v460_v9 }
 0x263   : >> { %v385_v18 = vsel %vm384_vm6, %v380_v17, inf  ;;  %v463_v17 = vmul.f32 (%p334_p12), %v461_v10, %v461_v10  ;;  %v570_v47 = vand.u32 (%p334_p12), 4294901760, %v495_v14 }
 0x264   : >> { %386 = vmin.xlane.f32.xlu1 %v385_v18  ;;  %v390_v22 = vshll.u32 %v389_v20, 16  ;;  %v580_v18 = vand.u32 (%p334_p12), 4294901760, %v498_v15  ;;  %v465_v20 = vsel (%p334_p12), %vm464_vm12, %v462_v16, 0.0 }
 0x265   : > { %v468_v11 = vsel (%p334_p12), %vm464_vm12, %v463_v17, 0.0 }
 0x266   : > { %v581_v4 = vsub.f32 (%p334_p12), %v498_v15, %v580_v18 }
 0x268   : > { %v582_v13 = vand.u32 (%p334_p12), 4294901760, %v581_v4 }
 0x2f1   : >> { %v387_v21 = vpop.xlane.xlu1 %386 }
 0x2f2   : >> { %v388_v23 = vcvt.f32.s32 %v387_v21  ;;  %v571_v21 = vsub.f32 (%p334_p12), %v495_v14, %v570_v47 }
 0x2f4   : >> { %v391_v24 = vadd.s32 %v390_v22, %v388_v23  ;;  %1429 = vmatprep.mubr.f32.mxu0 (%p334_p12), %v571_v21  ;;  %v572_v12 = vand.u32 (%p334_p12), 4294901760, %v571_v21 }
 0x2f6   : >> { %v392_v25 = vrot.slane %v391_v24, 4 }
 0x2f8   : >> { %vm393_vm7 = vcmp.lt.s32.totalorder %v391_v24, %v392_v25 }
 0x2f9   : >> { %v394_v26 = vsel %vm393_vm7, %v391_v24, %v392_v25  ;;  %vm1007_vm7 = vcmask (%p334_p12), 130048  }
 0x2fa   : >> { %v395_v27 = vrot.slane %v394_v26, 2 }
 0x2fc   : >> { %vm396_vm8 = vcmp.lt.s32.totalorder %v394_v26, %v395_v27 }
 0x2fd   : >> { %v397_v28 = vsel %vm396_vm8, %v394_v26, %v395_v27  ;;  %vm452_vm8 = vcmask (%p334_p12), 60416  }
 0x2fe   : >> { %v398_v29 = vrot.slane %v397_v28, 1 }
 0x300   : >> { %vm399_vm9 = vcmp.lt.s32.totalorder %v397_v28, %v398_v29 }
 0x301   : >> { %v400_v30 = vsel %vm399_vm9, %v397_v28, %v398_v29 }
 0x302   : >> { %1472 = vpush %v400_v30  ;;  %v1750_v30 = vmov (%p334_p12), 0.0  }
 0x303   : > { %454 = vst.msk [vmem:[#allocation4] sm:$0x1] (%p334_p12), %vm445_vm11, %v1750_v30 }
 0x333   : >> { %s1473_s5 = spop %1472 }
 0x334   : >> { %s402_s6 = scalar_lea.vmem %s1849_s8, %s1473_s5  ;;  %s1393_s8 = sshll.u32 (%p334_p12), %s1708_s18, 6 }
 0x335   : >> { %v403_v31 = vld [vmem:[%s402_s6] sm:$0x1]  ;;  %s2074_s10 = scalar_lea.hbm (%p334_p12), %s2130_s4, %s1393_s8  ;;  %s1209_s18 = scalar_lea.sflag (%p334_p12), [#allocation7], %s243_s29 }
 0x336   : >> { %v415_v32 = vsel %vm302_vm2, %v403_v31, 0.0  ;;  %v404_v33 = vsel %vm289_vm1, %v403_v31, 0.0  ;;  %v426_v36 = vsel %vm314_vm0, %v403_v31, 0.0  ;;  %v471_v31 = vld [vmem:[%s1854_s11] sm:$0xf] (%p334_p12)  ;;  %vm456_vm0 = vcmask (%p334_p12), 3072  }
 0x337   : >> { %v416_v34 = vsel %vm291_vm3, %v415_v32, 0.0  ;;  %v405_v35 = vsel %vm291_vm3, %v404_v33, 0.0  ;;  %v427_v37 = vsel %vm291_vm3, %v426_v36, 0.0  ;;  %v1992_v32 = vsub.s32 (%p334_p12), 0, %v1838_v1 }
 0x338   : >> { %417 = vadd.xlane.f32.xlu0 %v416_v34  ;;  %406 = vadd.xlane.f32.xlu1 %v405_v35  ;;  %v1077_v33 = vsub.s32 (%p334_p12), 1, %v1838_v1  ;;  %v1752_v36 = vmov (%p334_p12), 0   ;;  %vm477_vm1 = vcmp.le.s32.totalorder (%p334_p12), %v1840_v2, %v1838_v1  ;;  %vm1120_vm3 = vcmask (%p334_p12), 64512  }
 0x339   : > { %v1067_v34 = vrot.slane (%p334_p12), %v471_v31, %v1992_v32  ;;  %1604 = vset.pattern.permute.xlu1 (%p334_p12), %v1752_v36  ;;  %1605 = vset.pattern.permute.xlu0 (%p334_p12), %v1752_v36  ;;  %v1385_v9 = vsel (%p334_p12), %vm477_vm1, 1.0, %v1750_v30 }
 0x33a   : > { %v1078_v35 = vrot.slane (%p334_p12), %v471_v31, %v1077_v33 }
 0x33c   : >> { %428 = vadd.xlane.f32.xlu1 %v427_v37  ;;  %466 = vadd.xlane.f32.xlu0 (%p334_p12), %v465_v20  ;;  %v1088_v37 = vsub.s32 (%p334_p12), 2, %v1838_v1 }
 0x340   : > { %469 = vadd.xlane.f32.xlu0 (%p334_p12), %v468_v11 }
 0x34d   : > { %1069 = vbcast.lane.b32.xlu1 (%p334_p12), %v1067_v34, 256 }
 0x351   : > { %1073 = vbcast.lane.b32.xlu1 (%p334_p12), %v1067_v34, 264 }
 0x355   : > { %1084 = vbcast.lane.b32.xlu1 (%p334_p12), %v1078_v35, 264 }
 0x356   : > { %1080 = vbcast.lane.b32.xlu0 (%p334_p12), %v1078_v35, 256 }
 0x3c5   : >> { %v418_v38 = vpop.xlane.xlu0 %417  ;;  %v407_v39 = vpop.xlane.xlu1 %406 }
 0x3c6   : >> { %v419_v40 = vrot.slane %v418_v38, 4  ;;  %v408_v41 = vrot.slane %v407_v39, 4 }
 0x3c8   : >> { %v420_v43 = vadd.f32 %v419_v40, %v418_v38  ;;  %v409_v45 = vadd.f32 %v408_v41, %v407_v39  ;;  %v1089_v38 = vrot.slane (%p334_p12), %v471_v31, %v1088_v37  ;;  %v455_v39 = vld [vmem:[%s1854_s11] sm:$0xf] (%p334_p12)  ;;  %v1099_v40 = vsub.s32 (%p334_p12), 3, %v1838_v1  ;;  %s1225_s11 = sshll.u32 (%p334_p12), %s245_s9, 4  ;;  %s2076_s11 = int_to_ptr.vmem [resolvable:$true] %s1225_s11 }
 0x3c9   : >> { %v429_v48 = vpop.xlane.xlu1 %428  ;;  %457 = vst.msk [vmem:[#allocation5] sm:$0xf] (%p334_p12), %vm456_vm0, %v455_v39  ;;  %s1606_s12 = scalar_lea.vmem (%p334_p12), %s2076_s11, 64  ;;  %p1613_p2 = scmp.lt.s32.totalorder (%p334_p12), %s2076_s11, %s1611_s21 }
 0x3ca   : >> { %v421_v49 = vrot.slane %v420_v43, 2  ;;  %v410_v50 = vrot.slane %v409_v45, 2  ;;  %v430_v51 = vrot.slane %v429_v48, 4  ;;  %1091 = vbcast.lane.b32.xlu1 (%p334_p12), %v1089_v38, 256  ;;  %v1100_v41 = vrot.slane (%p334_p12), %v471_v31, %v1099_v40  ;;  %p1607_p13 = scmp.ne.s32.totalorder (%p334_p12), %s2076_s11, %s1606_s12  ;;  %p1614_p3 = scmp.lt.s32.totalorder (%p334_p12), %s1612_s22, %s1606_s12 }
 0x3cc   : >> { %v422_v52 = vadd.f32 %v421_v49, %v420_v43  ;;  %v431_v53 = vadd.f32 %v430_v51, %v429_v48  ;;  %v411_v54 = vadd.f32 %v410_v50, %v409_v45  ;;  %p1608_p0 = pnand (%p334_p12), %p1607_p13, %p1821_p4  ;;  %p1615_p5 = por (%p334_p12), %p1614_p3, %p1613_p2 }
 0x3ce   : >> { %v432_v55 = vrot.slane %v431_v53, 2  ;;  %v412_v56 = vrot.slane %v411_v54, 1  ;;  %v423_v57 = vrot.slane %v422_v52, 1  ;;  %1095 = vbcast.lane.b32.xlu1 (%p334_p12), %v1089_v38, 264  ;;  %p1609_p1 = pneg (%p334_p12), %p1608_p0 }
 0x3d0   : >> { %v433_v58 = vadd.f32 %v432_v55, %v431_v53  ;;  %v413_v59 = vadd.f32 %v412_v56, %v411_v54  ;;  %v424_v60 = vadd.f32 %v423_v57, %v422_v52  ;;  %v1190_v43 = vld [vmem:[#allocation5] sm:$0xf] (%p334_p12)  ;;  %v467_v55 = vpop.xlane.xlu0 (%p334_p12), %466  ;;  %p1616_p6 = pnand (%p334_p12), %p1615_p5, %p1609_p1 }
 0x3d2   : >> { %1474 = vpush %v413_v59  ;;  %v434_v61 = vrot.slane %v433_v58, 1  ;;  %1102 = vbcast.lane.b32.xlu1 (%p334_p12), %v1100_v41, 256  ;;  %v474_v59 = vadd.s32 (%p334_p12), 8, %v1838_v1 }
 0x3d3   : >> { %1476 = vpush %v424_v60 }
 0x3d4   : >> { %v435_v62 = vadd.f32 %v434_v61, %v433_v58  ;;  %v470_v57 = vpop.xlane.xlu0 (%p334_p12), %469  ;;  %vm478_vm2 = vcmp.le.s32.totalorder (%p334_p12), %v1840_v2, %v474_v59 }
 0x3d5   : > { %v1386_v10 = vsel (%p334_p12), %vm478_vm2, 1.0, %v1750_v30 }
 0x3d6   : >> { %1478 = vpush %v435_v62  ;;  %1106 = vbcast.lane.b32.xlu1 (%p334_p12), %v1100_v41, 264  ;;  %v483_v17 = vpack.c.bf16 (%p334_p12), %v1386_v10, %v1385_v9 }
 0x3d8   : > { %v1081_v38 = vpop.permute.xlu0 (%p334_p12), %1080 }
 0x3da   : > { %1199 = vperm.xlu1 (%p334_p12), %1604, %v1190_v43  }
 0x403   : >> { %s1475_s5 = spop %1474  }
 0x404   : >> { %v439_v0 = vstv %s1475_s5  ;;  %s1477_s6 = spop %1476   ;;  %336 = sbr.rel (!%p334_p12) target bundleno = 240 (0xf0), region = 104 }
 0x405   : >> { %v440_v3 = vsel %vm438_vm10, %v439_v0, %v1728_v42   ;;  %v441_v5 = vstv %s1477_s6 }
 0x406   : >> { %v442_v6 = vsel %vm438_vm10, %v441_v5, %v1724_v44   ;;  %v2135_v42 = vmov %v440_v3  ;;  %446 = vst.msk [vmem:[#allocation2] sm:$0x1] (%p334_p12), %vm445_vm11, %v440_v3 }
 0x407   : >> { %s1479_s7 = spop %1478   ;;  %v2134_v44 = vmov %v442_v6  ;;  %447 = vst.msk [vmem:[#allocation2 + $0x1] sm:$0x1] (%p334_p12), %vm445_vm11, %v442_v6  ;;  %v573_v42 = vsub.f32 (%p334_p12), %v571_v21, %v572_v12 }
 0x408   : >> { %v443_v7 = vstv %s1479_s7  ;;  %v583_v44 = vsub.f32 (%p334_p12), %v581_v4, %v582_v13 }
 0x409   : >> { %v444_v8 = vsel %vm438_vm10, %v443_v7, %v1720_v46   ;;  %v574_v23 = vand.u32 (%p334_p12), 4294901760, %v573_v42 }
 0x40a   : >> { %v2133_v46 = vmov %v444_v8  ;;  %448 = vst.msk [vmem:[#allocation2 + $0x2] sm:$0x1] (%p334_p12), %vm445_vm11, %v444_v8  ;;  %v584_v24 = vand.u32 (%p334_p12), 4294901760, %v583_v44 }
 0x40b   : > { %1419 = vmatprep.mubr.f32.mxu1 %v574_v23 }
 0x411   : > { %v1984_v19 = vld [vmem:[#allocation2] sm:$0x7] }
 0x412   : > { %v502_v46 = vsel %vm500_vm13, %v1984_v19, 0  ;;  %v449_v29 = vld [vmem:[#allocation2] sm:$0x7]  ;;  %v485_v45 = vmul.f32 %v1984_v19, %v1984_v19  ;;  %v1001_v19 = vld [vmem:[#allocation4] sm:$0x1]  ;;  %vm1162_vm13 = vcmask 1041409  }
 0x413   : > { %v505_v22 = vand.u32 4294901760, %v502_v46  ;;  %451 = vst.msk [vmem:[%s1859_s14] sm:$0x7] %vm450_vm14, %v449_v29 }
 0x414   : > { %v487_v48 = vsel %vm450_vm14, %v485_v45, 0.0  ;;  %vm1164_vm14 = vcmask 1042434  }
 0x415   : > { %v592_v25 = vsub.f32 %v502_v46, %v505_v22  ;;  %1417 = vmatprep.subr.mxu1 %v505_v22  ;;  %v488_v49 = vrot.slane %v487_v48, 4  ;;  %v1754_v46 = vmov -3e+38  }
 0x416   : > { %1418 = vmatpush3.msra.mxu1 %v505_v22  ;;  %453 = vst.msk [vmem:[#allocation3] sm:$0xf] %vm452_vm8, %v1754_v46 }
 0x417   : > { %1427 = vmatprep.subr.mxu0 %v592_v25  ;;  %1420 = vmatmul.mubr.f32.vlgmr.msra.gmra.mrb[0].mxu1 %v584_v24  ;;  %v593_v26 = vand.u32 4294901760, %v592_v25  ;;  %v489_v52 = vadd.f32 %v488_v49, %v487_v48 }
 0x418   : > { %1428 = vmatpush3.msra.mxu0 %v592_v25  ;;  %1424 = vmatprep.mubr.f32.mxu1 %v570_v47 }
 0x419   : > { %1430 = vmatmul.mubr.f32.vlgmr.msra.gmra.mrb[0].mxu0 %v581_v4  ;;  %1432 = vmatprep.subr.mxu0 %v505_v22  ;;  %v594_v27 = vsub.f32 %v592_v25, %v593_v26  ;;  %v490_v53 = vrot.slane %v489_v52, 2 }
 0x41a   : > { %1433 = vmatpush3.msra.mxu0 %v505_v22  ;;  %1434 = vmatprep.mubr.f32.mxu0 %v572_v12 }
 0x41b   : > { %1437 = vmatprep.subr.mxu0 %v593_v26  ;;  %v595_v28 = vand.u32 4294901760, %v594_v27  ;;  %v491_v54 = vadd.f32 %v490_v53, %v489_v52  ;;  %v1056_v27 = vrot.slane %v1001_v19, %v1992_v32 }
 0x41d   : > { %1422 = vmatprep.subr.mxu1 %v595_v28  ;;  %v492_v56 = vrot.slane %v491_v54, 1 }
 0x41e   : > { %1423 = vmatpush3.msra.mxu1 %v595_v28 }
 0x41f   : > { %1425 = vmatmul.mubr.f32.vlgmr.msra.gmra.mrb[0].mxu1 %v580_v18  ;;  %1447 = vmatprep.subr.bf16.mxu1 %v1750_v30  ;;  %v493_v58 = vadd.f32 %v492_v56, %v491_v54 }
 0x420   : > { %1449 = vmatprep.mubr.msk.bf16.mxu1 %vm1751_vm15, %v1750_v30  ;;  %vm1166_vm15 = vcmask 1043459  }
 0x421   : > { %1435 = vmatmul.mubr.f32.vlgmr.msra.gmra.mrb[0].mxu0 %v582_v13  ;;  %v994_v63 = vadd.f32 %v493_v58, %v470_v57  ;;  %v993_v5 = vadd.f32 %v493_v58, %v467_v55 }
 0x422   : > { %1438 = vmatpush3.msra.mxu0 %v593_v26  ;;  %1439 = vmatprep.mubr.f32.mxu0 %v570_v47 }
 0x423   : > { %1442 = vmatprep.subr.mxu0 %v505_v22 }
 0x429   : > { %1440 = vmatmul.mubr.f32.vlgmr.msra.gmra.mrb[0].mxu0 %v580_v18 }
 0x42a   : > { %1443 = vmatpush3.msra.mxu0 %v505_v22  ;;  %1444 = vmatprep.mubr.f32.mxu0 %v570_v47  ;;  %v1070_v22 = vpop.permute.xlu1 %1069 }
 0x42e   : > { %v1074_v23 = vpop.permute.xlu1 %1073 }
 0x431   : > { %1445 = vmatmul.mubr.f32.vlgmr.msra.gmra.mrb[0].mxu0 %v580_v18  ;;  %v1753_v18 = vmov 1.0|1.0  }
 0x432   : > { %v1085_v24 = vpop.permute.xlu1 %1084 }
 0x43c   : > { %v1092_v25 = vpop.permute.xlu1 %1091 }
 0x440   : > { %v1096_v26 = vpop.permute.xlu1 %1095 }
 0x444   : > { %v1103_v31 = vpop.permute.xlu1 %1102 }
 0x4f2   : > { %v1426_v50 = vpop.f32.mrb[0].mxu1 }
 0x4f3   : > { %v662_v51 = vpop.f32.mrb[1].mxu1 }
 0x504   : > { %v1446_v60 = vpop.f32.mrb[0].mxu0 }
 0x505   : > { %v1453_v61 = vadd.f32 %v1446_v60, %v1426_v50  ;;  %v983_v62 = vpop.f32.mrb[1].mxu0  ;;  %v1107_v50 = vpop.permute.xlu1 %1106 }
 0x506   : > { %v1454_v0 = vadd.f32 %v983_v62, %v662_v51 }
 0x507   : > { %v996_v3 = vmul.f32 2.0, %v1453_v61 }
 0x508   : > { %v995_v6 = vmul.f32 2.0, %v1454_v0 }
 0x509   : > { %v998_v7 = vsub.f32 %v994_v63, %v996_v3 }
 0x50a   : > { %v997_v8 = vsub.f32 %v993_v5, %v995_v6 }
 0x50b   : > { %vm2008_vm4 = vcmp.lt.f32.partialorder %v998_v7, 0.2025 }
 0x50c   : > { %vm2012_vm5 = vcmp.lt.f32.partialorder %v997_v8, 0.2025  ;;  %v1388_v1 = vsel %vm2008_vm4, 1.0, %v1750_v30 }
 0x50d   : > { %v1387_v2 = vsel %vm2012_vm5, 1.0, %v1750_v30  ;;  %vm1389_vm6 = vmpackc.low %vm2008_vm4, %vm2012_vm5  ;;  %v1173_v16 = vsel %vm1120_vm3, %v1388_v1, 0.0 }
 0x50e   : > { %v1172_v47 = vsel %vm1120_vm3, %v1387_v2, 0.0  ;;  %1448 = vmatpush3.bf16.msk.msra.mxu1 %vm1389_vm6, %v1753_v18 }
 0x50f   : > { %v1174_v20 = vadd.f32 %v1173_v16, %v1172_v47 }
 0x511   : > { %v1175_v21 = vrot.slane %v1174_v20, 4  ;;  %1450 = vmatmul.mubr.msk.bf16.vlgmr.msra.gmra.mrb[4].mxu1 %vm1007_vm7, %v483_v17 }
 0x513   : > { %v1176_v4 = vadd.f32 %v1175_v21, %v1174_v20 }
 0x515   : > { %v1177_v11 = vrot.slane %v1176_v4, 2 }
 0x517   : > { %v1178_v12 = vadd.f32 %v1177_v11, %v1176_v4 }
 0x519   : > { %v1179_v13 = vrot.slane %v1178_v12, 1 }
 0x51b   : > { %v1180_v42 = vadd.f32 %v1179_v13, %v1178_v12 }
 0x51d   : > { %v1181_v44 = vadd.f32 %v1180_v42, %v1001_v19 }
 0x51f   : > { %1183 = vst.msk [vmem:[#allocation4] sm:$0x1] %vm445_vm11, %v1181_v44 }
 0x526   : > { %v1187_v44 = vld [vmem:[#allocation4] sm:$0x1] }
 0x527   : > { %vm1188_vm0 = vcmp.gt.f32.partialorder %v1187_v44, 0.0 }
 0x5e4   : > { %v1045_v28 = vpop.f32.mrb[4].mxu1 }
 0x5e5   : > { %v1058_v29 = vadd.f32 %v1056_v27, %v1045_v28  ;;  %v1451_v30 = vpop.f32.mrb[5].mxu1 }
 0x5e6   : > { %v1048_v33 = vpop.f32.mrb[6].mxu1 }
 0x5e7   : > { %vm1060_vm9 = vcmp.le.f32.partialorder %v1058_v29, 4.0  ;;  %v1059_v34 = vadd.f32 %v1056_v27, %v1048_v33  ;;  %v1452_v35 = vpop.f32.mrb[7].mxu1  ;;  %v1191_v27 = vsel %vm1188_vm0, 1, %v1752_v36  ;;  %v1200_v29 = vpop.permute.xlu1 %1199 }
 0x5e8   : > { %vm2031_vm10 = vmand %vm2012_vm5, %vm1060_vm9  ;;  %v1195_v28 = vrot.slane %v1191_v27, %v1992_v32 }
 0x5e9   : > { %v1112_v39 = vsel %vm2031_vm10, %v1070_v22, -3e+38  ;;  %v1116_v40 = vsel %vm2031_vm10, %v1092_v25, -3e+38  ;;  %vm1061_vm11 = vcmp.le.f32.partialorder %v1059_v34, 4.0 }
 0x5ea   : > { %v1121_v41 = vsel %vm1120_vm3, %v1112_v39, -inf  ;;  %v1139_v43 = vsel %vm1120_vm3, %v1116_v40, -inf  ;;  %v1118_v45 = vsel %vm2031_vm10, %v1103_v31, -3e+38  ;;  %vm2045_vm12 = vmand %vm2008_vm4, %vm1061_vm11  ;;  %v1114_v49 = vsel %vm2031_vm10, %v1081_v38, -3e+38 }
 0x5eb   : > { %v1113_v51 = vsel %vm2045_vm12, %v1074_v23, -3e+38  ;;  %v1117_v52 = vsel %vm2045_vm12, %v1096_v26, -3e+38  ;;  %v1115_v53 = vsel %vm2045_vm12, %v1085_v24, -3e+38 }
 0x5ec   : > { %v1122_v54 = vsel %vm1120_vm3, %v1113_v51, -inf  ;;  %v1140_v55 = vsel %vm1120_vm3, %v1117_v52, -inf  ;;  %v1130_v56 = vsel %vm1120_vm3, %v1114_v49, -inf  ;;  %v1131_v57 = vsel %vm1120_vm3, %v1115_v53, -inf  ;;  %v1157_v23 = vld [vmem:[#allocation3] sm:$0xf] }
 0x5ed   : > { %v1123_v58 = vmax.f32 %v1121_v41, %v1122_v54  ;;  %v1141_v59 = vmax.f32 %v1139_v43, %v1140_v55  ;;  %v1132_v60 = vmax.f32 %v1130_v56, %v1131_v57  ;;  %v1119_v61 = vsel %vm2045_vm12, %v1107_v50, -3e+38 }
 0x5ee   : > { %v1148_v62 = vsel %vm1120_vm3, %v1118_v45, -inf  ;;  %v1149_v63 = vsel %vm1120_vm3, %v1119_v61, -inf  ;;  %vm1196_vm1 = vcmp.eq.s32.totalorder %v1195_v28, 1 }
 0x5ef   : > { %v1124_v0 = vrot.slane %v1123_v58, 4  ;;  %v1142_v3 = vrot.slane %v1141_v59, 4  ;;  %v1133_v5 = vrot.slane %v1132_v60, 4  ;;  %v1150_v6 = vmax.f32 %v1148_v62, %v1149_v63 }
 0x5f1   : > { %v1125_v7 = vmax.f32 %v1123_v58, %v1124_v0  ;;  %v1143_v8 = vmax.f32 %v1141_v59, %v1142_v3  ;;  %v1134_v9 = vmax.f32 %v1132_v60, %v1133_v5  ;;  %v1151_v10 = vrot.slane %v1150_v6, 4 }
 0x5f3   : > { %v1126_v14 = vrot.slane %v1125_v7, 2  ;;  %v1144_v15 = vrot.slane %v1143_v8, 2  ;;  %v1135_v1 = vrot.slane %v1134_v9, 2  ;;  %v1152_v2 = vmax.f32 %v1150_v6, %v1151_v10 }
 0x5f5   : > { %v1127_v16 = vmax.f32 %v1125_v7, %v1126_v14  ;;  %v1145_v17 = vmax.f32 %v1143_v8, %v1144_v15  ;;  %v1136_v47 = vmax.f32 %v1134_v9, %v1135_v1  ;;  %v1153_v18 = vrot.slane %v1152_v2, 2 }
 0x5f7   : > { %v1128_v20 = vrot.slane %v1127_v16, 1  ;;  %v1146_v21 = vrot.slane %v1145_v17, 1  ;;  %v1137_v4 = vrot.slane %v1136_v47, 1  ;;  %v1154_v11 = vmax.f32 %v1152_v2, %v1153_v18 }
 0x5f9   : > { %v1129_v12 = vmax.f32 %v1127_v16, %v1128_v20  ;;  %v1147_v13 = vmax.f32 %v1145_v17, %v1146_v21  ;;  %v1138_v19 = vmax.f32 %v1136_v47, %v1137_v4  ;;  %v1155_v42 = vrot.slane %v1154_v11, 1 }
 0x5fb   : > { %v1163_v46 = vsel %vm1162_vm13, %v1138_v19, %v1129_v12  ;;  %v1156_v22 = vmax.f32 %v1154_v11, %v1155_v42 }
 0x5fc   : > { %v1165_v24 = vsel %vm1164_vm14, %v1147_v13, %v1163_v46 }
 0x5fd   : > { %v1167_v25 = vsel %vm1166_vm15, %v1156_v22, %v1165_v24 }
 0x5fe   : > { %v1169_v26 = vmax.f32 %v1157_v23, %v1167_v25 }
 0x600   : > { %1171 = vst.msk [vmem:[#allocation3] sm:$0xf] %vm452_vm8, %v1169_v26 }
 0x607   : > { %v1189_v30 = vld [vmem:[#allocation3] sm:$0xf] }
 0x608   : > { %v1202_v36 = vsel %vm1196_vm1, %v1189_v30, %v1200_v29 }
 0x609   : > { %1203 = vst.msk [vmem:[%s245_s9] sm:$0xf] %vm452_vm8, %v1202_v36 }
 0x60a   : > { %1619 = shalt.err (!%p1616_p6)
}
 0x60b   : > { %s1620_s29 = scalar_lea.hbm %s2074_s10, 64  ;;  %s1624_s24 = scalar_lea.hbm %s2130_s4, 128 }
 0x60c   : > { %p1621_p7 = scmp.ne.s32.totalorder %s2074_s10, %s1620_s29  ;;  %p1625_p11 = scmp.lt.u32.totalorder %s2074_s10, %s2130_s4 }
 0x60d   : > { %p1626_p12 = scmp.lt.u32.totalorder %s1624_s24, %s1620_s29  ;;  %p1628_p0 = scmp.lt.u32.totalorder %s1620_s29, %s2074_s10 }
 0x60e   : > { %p1622_p9 = pnand %p1621_p7, %p1821_p4 }
 0x60f   : > { %p1627_p13 = por %p1626_p12, %p1625_p11 }
 0x610   : > { %p1623_p10 = pneg %p1622_p9 }
 0x611   : > { %p1629_p1 = por %p1628_p0, %p1627_p13 }
 0x613   : > { %p1630_p2 = pnand %p1629_p1, %p1623_p10 }
 0x615   : > { %1633 = shalt.err (!%p1630_p2)
}
 0x616   : > { %1480 = dma.vmem_to_hbm [thread:$0]  (%p1821_p4), %s2076_s11, 64, %s2074_s10, %s1209_s18  }
 0x617 PF: > { %p1486_p3 = scmp.ge.s32.totalorder %s1716_s20, 2  ;;  %s1244_s6 = sand.u32 1, %s1696_s15  }
 0x618   : > { %s1245_s8 = scalar_lea.sflag [#allocation7], %s1244_s6 }
 0x619   : > { %p1483_p5 = pnand %p1486_p3, %p1828_p8 }
 0x61b   : > { %1691 = dma.done.wait (!%p1483_p5), %s1245_s8, 64  }
 0x61c   : > { %1693 = vsyncadd (!%p1483_p5), %s1245_s8, 4294967232  ;;  %s18_s20 = sadd.s32 1, %s1716_s20   ;;  %s2144_s15 = smov %s1700_s16 }
 0x61d   : > { %p15_p6 = scmp.ge.s32.totalorder %s18_s20, 4   ;;  %s2145_s16 = smov %s1704_s17 }
 0x61e   : > { %s2146_s17 = smov %s1834_s28  ;;  %s2147_s18 = smov %s1712_s19 }
 0x61f   : > { %s2148_s19 = smov %s2150_s23  ;;  %17 = sbr.rel (!%p15_p6) target bundleno = 4 (0x4), region = 115 }
 0x626   :  { %1250 = vsyncpa [#allocation7], 1 }
 0x627   :  { %1252 = vsyncpa [#allocation7 + $0x1], 1 }

</bundles_post_ra>
